<compile_context>
chip_gen: v7x
topology: tpu7x:2x2x1
jax: 0.10.0
libtpu: 0.0.40
codegen_flags: <defaults>
</compile_context>

<pallas_src>
import functools
import math

import jax
import jax.numpy as jnp
from jax.experimental import pallas as pl
from jax.experimental.pallas import tpu as pltpu


def _round_up(v, m):
    return ((v + m - 1) // m) * m


def _vn_maxpool_kernel(x0_ref, x1_ref, x2_ref, w_ref, o_ref,
                       best_dot_ref, best_vec_ref, *, n_valid, tn, n_pad):
    # x{0,1,2}_ref: (1, C, tn) lane-tiles of the k-th 3-vector component
    # w_ref: (C, C)   o_ref: (1, C, 3)
    # best_dot_ref: (C, 1) f32 running max    best_vec_ref: (C, 3) f32 running best
    j = pl.program_id(1)

    @pl.when(j == 0)
    def _init():
        best_dot_ref[...] = jnp.full(best_dot_ref.shape, -jnp.inf,
                                     dtype=best_dot_ref.dtype)
        best_vec_ref[...] = jnp.zeros(best_vec_ref.shape, dtype=best_vec_ref.dtype)

    x0 = x0_ref[0]                                    # (C, tn), native dtype
    x1 = x1_ref[0]
    x2 = x2_ref[0]

    # One fused MXU matmul over the (C, 3*tn) slab (lane-concat is 128-aligned).
    xs = jnp.concatenate([x0, x1, x2], axis=-1)       # (C, 3*tn)
    d = jnp.dot(w_ref[...], xs, preferred_element_type=jnp.float32)   # (C, 3*tn) f32
    prod = xs.astype(jnp.float32) * d
    dot = prod[:, :tn] + prod[:, tn:2 * tn] + prod[:, 2 * tn:]        # (C, tn) f32

    lane = jax.lax.broadcasted_iota(jnp.int32, dot.shape, 1)          # (C, tn)
    if n_valid != n_pad:          # static: mask padded sample columns
        dot = jnp.where(j * tn + lane < n_valid, dot, -jnp.inf)

    # First-index argmax inside the tile (matches torch.max tie-breaking).
    m = jnp.max(dot, axis=-1, keepdims=True)                          # (C, 1)
    idx = jnp.min(jnp.where(dot == m, lane, tn), axis=-1, keepdims=True)
    onehot = lane == idx                                              # (C, tn) bool

    def pick(xk):
        # exact per-channel gather of this tile's winning sample
        return jnp.sum(jnp.where(onehot, xk.astype(jnp.float32), 0.0),
                       axis=-1, keepdims=True)                        # (C, 1)

    cand = jnp.concatenate([pick(x0), pick(x1), pick(x2)], axis=-1)   # (C, 3)

    # Online update: strict '>' vs the stored running max keeps the earliest tile on ties.
    upd = m > best_dot_ref[...]                                       # (C, 1) bool
    best_dot_ref[...] = jnp.where(upd, m, best_dot_ref[...])
    best_vec_ref[...] = jnp.where(upd, cand, best_vec_ref[...])

    @pl.when(j == pl.num_programs(1) - 1)
    def _finalize():
        o_ref[0] = best_vec_ref[...].astype(o_ref.dtype)


def vn_max_pool(x, w, *, tn_max=512):
    """x: [B, C, 3, N] (f32 or bf16), w: [C, C].  Returns [B, C, 3]."""
    B, C, K, N = x.shape
    assert K == 3, "VNMaxPool expects 3-vectors on axis 2"

    # Pad the samples axis to a multiple of 128 (lane-legal); padded columns are masked
    # to -inf in-kernel so they can never win the argmax.
    n_pad = _round_up(N, 128)
    if n_pad != N:
        x = jnp.pad(x, ((0, 0), (0, 0), (0, 0), (0, n_pad - N)))

    # Largest 128-multiple tile that divides n_pad, capped at tn_max.
    tn_cap = max(128, (tn_max // 128) * 128)
    tn = 128
    for t in range(min(tn_cap, n_pad), 127, -128):
        if n_pad % t == 0:
            tn = t
            break
    nj = n_pad // tn

    # Contiguous view: K flattened into the lane axis (k-major: lane = k*n_pad + n).
    xf = x.reshape(B, C, 3 * n_pad)

    kernel = functools.partial(_vn_maxpool_kernel, n_valid=N, tn=tn, n_pad=n_pad)

    def x_map(k):
        # block index along the flattened 3*n_pad axis: tile j of component k
        return lambda b, j, k=k: (b, 0, k * nj + j)

    return pl.pallas_call(
        kernel,
        out_shape=jax.ShapeDtypeStruct((B, C, 3), x.dtype),
        grid_spec=pltpu.PrefetchScalarGridSpec(
            num_scalar_prefetch=0,
            grid=(B, nj),
            in_specs=[
                pl.BlockSpec((1, C, tn), x_map(0)),
                pl.BlockSpec((1, C, tn), x_map(1)),
                pl.BlockSpec((1, C, tn), x_map(2)),
                pl.BlockSpec((C, C), lambda b, j: (0, 0)),
            ],
            out_specs=pl.BlockSpec((1, C, 3), lambda b, j: (b, 0, 0)),
            scratch_shapes=[
                pltpu.VMEM((C, 1), jnp.float32),   # running max dot
                pltpu.VMEM((C, 3), jnp.float32),   # running best 3-vector
            ],
        ),
        compiler_params=pltpu.CompilerParams(
            dimension_semantics=("parallel", "arbitrary"),
            vmem_limit_bytes=32 * 1024 * 1024,
        ),
    )(xf, xf, xf, w)


def vn_max_pool_ref(x, w):
    # pure-JAX reference replicating the PyTorch forward
    d = jnp.einsum("cd,bdkn->bckn", w, x, precision=jax.lax.Precision.HIGHEST)
    dot = jnp.sum(x * d, axis=2)                             # (B, C, N)
    idx = jnp.argmax(dot, axis=-1)                           # (B, C)
    return jnp.take_along_axis(x, idx[:, :, None, None], axis=-1)[..., 0]


if __name__ == "__main__":
    B, C, K, N = 2, 4, 3, 16   # batch, in_channels (N_feat), 3-vector, N_samples

    key = jax.random.PRNGKey(0)
    kx, kw = jax.random.split(key)
    x = jax.random.normal(kx, (B, C, K, N), dtype=jnp.float32)

    # nn.Linear(C, C, bias=False) default init: U(-1/sqrt(C), 1/sqrt(C)), deterministic here
    bound = 1.0 / math.sqrt(C)
    w = jax.random.uniform(kw, (C, C), minval=-bound, maxval=bound, dtype=jnp.float32)

    out = jax.block_until_ready(vn_max_pool(x, w))
    ref = jax.block_until_ready(vn_max_pool_ref(x, w))

    assert out.shape == (B, C, K), out.shape
    assert jnp.allclose(out, ref, atol=1e-5, rtol=1e-5)

    print("KERNEL_OK")
</pallas_src>

<mosaic_0001>
module attributes {stable_mosaic.version = 11 : i64} {
  func.func @_vn_maxpool_kernel(%arg0: i32, %arg1: i32, %arg2: memref<1x4x128xf32, #tpu.memory_space<vmem>>, %arg3: memref<1x4x128xf32, #tpu.memory_space<vmem>>, %arg4: memref<1x4x128xf32, #tpu.memory_space<vmem>>, %arg5: memref<4x4xf32, #tpu.memory_space<vmem>>, %arg6: memref<1x4x3xf32, #tpu.memory_space<vmem>>, %arg7: memref<4x1xf32, #tpu.memory_space<vmem>>, %arg8: memref<4x3xf32, #tpu.memory_space<vmem>>) attributes {dimension_semantics = [#tpu.dimension_semantics<parallel>, #tpu.dimension_semantics<arbitrary>], iteration_bounds = array<i64: 2, 1>, scalar_prefetch = 0 : i64, scratch_operands = 2 : i64, tpu.core_type = #tpu.core_type<tc>, window_params = [{transform_indices = @transform_0, window_bounds = array<i64: 1, 4, 128>}, {transform_indices = @transform_1, window_bounds = array<i64: 1, 4, 128>}, {transform_indices = @transform_2, window_bounds = array<i64: 1, 4, 128>}, {pipeline_mode = #tpu.pipeline_mode<synchronous>, transform_indices = @transform_3, window_bounds = array<i64: 4, 4>}, {transform_indices = @transform_4, window_bounds = array<i64: 1, 4, 3>}]} {
    %c0_i32 = arith.constant 0 : i32
    %0 = arith.cmpi eq, %arg1, %c0_i32 : i32
    %1 = arith.extui %0 : i1 to i32
    %c0_i32_0 = arith.constant 0 : i32
    %2 = arith.cmpi ne, %1, %c0_i32_0 : i32
    scf.if %2 {
      %cst_33 = arith.constant 0xFF800000 : f32
      %62 = vector.broadcast %cst_33 : f32 to vector<4x1xf32>
      %c0_34 = arith.constant 0 : index
      %c0_35 = arith.constant 0 : index
      %63 = vector.load %arg7[%c0_34, %c0_35] : memref<4x1xf32, #tpu.memory_space<vmem>>, vector<4x1xf32>
      tpu.vector_store %arg7[%c0_34, %c0_35], %62 {strides = array<i32>} : memref<4x1xf32, #tpu.memory_space<vmem>>, vector<4x1xf32>,
      %cst_36 = arith.constant 0.000000e+00 : f32
      %64 = vector.broadcast %cst_36 : f32 to vector<4x3xf32>
      %c0_37 = arith.constant 0 : index
      %c0_38 = arith.constant 0 : index
      %65 = vector.load %arg8[%c0_37, %c0_38] : memref<4x3xf32, #tpu.memory_space<vmem>>, vector<4x3xf32>
      tpu.vector_store %arg8[%c0_37, %c0_38], %64 {strides = array<i32>} : memref<4x3xf32, #tpu.memory_space<vmem>>, vector<4x3xf32>,
    } else {
    }
    %c0 = arith.constant 0 : index
    %c0_1 = arith.constant 0 : index
    %c0_2 = arith.constant 0 : index
    %3 = vector.load %arg2[%c0, %c0_1, %c0_2] : memref<1x4x128xf32, #tpu.memory_space<vmem>>, vector<1x4x128xf32>
    %4 = vector.shape_cast %3 : vector<1x4x128xf32> to vector<4x128xf32>
    %c0_3 = arith.constant 0 : index
    %c0_4 = arith.constant 0 : index
    %c0_5 = arith.constant 0 : index
    %5 = vector.load %arg3[%c0_3, %c0_4, %c0_5] : memref<1x4x128xf32, #tpu.memory_space<vmem>>, vector<1x4x128xf32>
    %6 = vector.shape_cast %5 : vector<1x4x128xf32> to vector<4x128xf32>
    %c0_6 = arith.constant 0 : index
    %c0_7 = arith.constant 0 : index
    %c0_8 = arith.constant 0 : index
    %7 = vector.load %arg4[%c0_6, %c0_7, %c0_8] : memref<1x4x128xf32, #tpu.memory_space<vmem>>, vector<1x4x128xf32>
    %8 = vector.shape_cast %7 : vector<1x4x128xf32> to vector<4x128xf32>
    %9 = tpu.concatenate %4, %6, %8 in 1 : vector<4x128xf32>, vector<4x128xf32>, vector<4x128xf32> -> vector<4x384xf32>
    %c0_9 = arith.constant 0 : index
    %c0_10 = arith.constant 0 : index
    %10 = vector.load %arg5[%c0_9, %c0_10] : memref<4x4xf32, #tpu.memory_space<vmem>>, vector<4x4xf32>
    %cst = arith.constant dense<0.000000e+00> : vector<4x384xf32>
    %11 = tpu.matmul %10, %9, %cst {dimension_numbers = #tpu.dot_dimension_numbers<[1], [0], [0], [1], [0, 0, 1, 1], [], []>} : vector<4x4xf32>, vector<4x384xf32>, vector<4x384xf32> -> vector<4x384xf32>
    %12 = arith.mulf %9, %11 : vector<4x384xf32>
    %13 = vector.extract_strided_slice %12 {offsets = [0, 0], sizes = [4, 128], strides = [1, 1]} : vector<4x384xf32> to vector<4x128xf32>
    %14 = vector.extract_strided_slice %12 {offsets = [0, 128], sizes = [4, 128], strides = [1, 1]} : vector<4x384xf32> to vector<4x128xf32>
    %15 = arith.addf %13, %14 : vector<4x128xf32>
    %16 = vector.extract_strided_slice %12 {offsets = [0, 256], sizes = [4, 128], strides = [1, 1]} : vector<4x384xf32> to vector<4x128xf32>
    %17 = arith.addf %15, %16 : vector<4x128xf32>
    %18 = tpu.iota {dimensions = array<i32: 1>} : vector<4x128xi32>
    %c128_i32 = arith.constant 128 : i32
    %19 = arith.muli %arg1, %c128_i32 : i32
    %20 = vector.broadcast %19 : i32 to vector<4x128xi32>
    %21 = arith.addi %20, %18 : vector<4x128xi32>
    %c16_i32 = arith.constant 16 : i32
    %22 = vector.broadcast %c16_i32 : i32 to vector<4x128xi32>
    %23 = arith.cmpi slt, %21, %22 : vector<4x128xi32>
    %cst_11 = arith.constant 0xFF800000 : f32
    %24 = vector.broadcast %cst_11 : f32 to vector<4x128xf32>
    %25 = arith.select %23, %17, %24 : vector<4x128xi1>, vector<4x128xf32>
    %cst_12 = arith.constant dense<0xFF800000> : vector<4xf32>
    %26 = vector.multi_reduction <maximumf>, %25, %cst_12 [1] : vector<4x128xf32> to vector<4xf32>
    %27 = vector.shape_cast %26 : vector<4xf32> to vector<4x1xf32>
    %28 = vector.broadcast %27 : vector<4x1xf32> to vector<4x128xf32>
    %29 = arith.cmpf oeq, %25, %28 : vector<4x128xf32>
    %c128_i32_13 = arith.constant 128 : i32
    %30 = vector.broadcast %c128_i32_13 : i32 to vector<4x128xi32>
    %31 = arith.select %29, %18, %30 : vector<4x128xi1>, vector<4x128xi32>
    %cst_14 = arith.constant dense<2147483647> : vector<4xi32>
    %32 = vector.multi_reduction <minsi>, %31, %cst_14 [1] : vector<4x128xi32> to vector<4xi32>
    %33 = vector.shape_cast %32 : vector<4xi32> to vector<4x1xi32>
    %34 = vector.broadcast %33 : vector<4x1xi32> to vector<4x128xi32>
    %35 = arith.cmpi eq, %18, %34 : vector<4x128xi32>
    %cst_15 = arith.constant 0.000000e+00 : f32
    %36 = vector.broadcast %cst_15 : f32 to vector<4x128xf32>
    %37 = arith.select %35, %4, %36 : vector<4x128xi1>, vector<4x128xf32>
    %cst_16 = arith.constant dense<0.000000e+00> : vector<4xf32>
    %38 = vector.multi_reduction <add>, %37, %cst_16 [1] : vector<4x128xf32> to vector<4xf32>
    %39 = vector.shape_cast %38 : vector<4xf32> to vector<4x1xf32>
    %cst_17 = arith.constant 0.000000e+00 : f32
    %40 = vector.broadcast %cst_17 : f32 to vector<4x128xf32>
    %41 = arith.select %35, %6, %40 : vector<4x128xi1>, vector<4x128xf32>
    %cst_18 = arith.constant dense<0.000000e+00> : vector<4xf32>
    %42 = vector.multi_reduction <add>, %41, %cst_18 [1] : vector<4x128xf32> to vector<4xf32>
    %43 = vector.shape_cast %42 : vector<4xf32> to vector<4x1xf32>
    %cst_19 = arith.constant 0.000000e+00 : f32
    %44 = vector.broadcast %cst_19 : f32 to vector<4x128xf32>
    %45 = arith.select %35, %8, %44 : vector<4x128xi1>, vector<4x128xf32>
    %cst_20 = arith.constant dense<0.000000e+00> : vector<4xf32>
    %46 = vector.multi_reduction <add>, %45, %cst_20 [1] : vector<4x128xf32> to vector<4xf32>
    %47 = vector.shape_cast %46 : vector<4xf32> to vector<4x1xf32>
    %48 = tpu.concatenate %39, %43, %47 in 1 : vector<4x1xf32>, vector<4x1xf32>, vector<4x1xf32> -> vector<4x3xf32>
    %c0_21 = arith.constant 0 : index
    %c0_22 = arith.constant 0 : index
    %49 = vector.load %arg7[%c0_21, %c0_22] : memref<4x1xf32, #tpu.memory_space<vmem>>, vector<4x1xf32>
    %50 = arith.cmpf ogt, %27, %49 : vector<4x1xf32>
    %c0_23 = arith.constant 0 : index
    %c0_24 = arith.constant 0 : index
    %51 = vector.load %arg7[%c0_23, %c0_24] : memref<4x1xf32, #tpu.memory_space<vmem>>, vector<4x1xf32>
    %52 = arith.select %50, %27, %51 : vector<4x1xi1>, vector<4x1xf32>
    %c0_25 = arith.constant 0 : index
    %c0_26 = arith.constant 0 : index
    %53 = vector.load %arg7[%c0_25, %c0_26] : memref<4x1xf32, #tpu.memory_space<vmem>>, vector<4x1xf32>
    tpu.vector_store %arg7[%c0_25, %c0_26], %52 {strides = array<i32>} : memref<4x1xf32, #tpu.memory_space<vmem>>, vector<4x1xf32>,
    %c0_27 = arith.constant 0 : index
    %c0_28 = arith.constant 0 : index
    %54 = vector.load %arg8[%c0_27, %c0_28] : memref<4x3xf32, #tpu.memory_space<vmem>>, vector<4x3xf32>
    %55 = vector.shape_cast %50 : vector<4x1xi1> to vector<4x1xi1>
    %56 = vector.broadcast %55 : vector<4x1xi1> to vector<4x3xi1>
    %57 = arith.select %56, %48, %54 : vector<4x3xi1>, vector<4x3xf32>
    %c0_29 = arith.constant 0 : index
    %c0_30 = arith.constant 0 : index
    %58 = vector.load %arg8[%c0_29, %c0_30] : memref<4x3xf32, #tpu.memory_space<vmem>>, vector<4x3xf32>
    tpu.vector_store %arg8[%c0_29, %c0_30], %57 {strides = array<i32>} : memref<4x3xf32, #tpu.memory_space<vmem>>, vector<4x3xf32>,
    %c0_i32_31 = arith.constant 0 : i32
    %59 = arith.cmpi eq, %arg1, %c0_i32_31 : i32
    %60 = arith.extui %59 : i1 to i32
    %c0_i32_32 = arith.constant 0 : i32
    %61 = arith.cmpi ne, %60, %c0_i32_32 : i32
    scf.if %61 {
      %c0_33 = arith.constant 0 : index
      %c0_34 = arith.constant 0 : index
      %62 = vector.load %arg8[%c0_33, %c0_34] : memref<4x3xf32, #tpu.memory_space<vmem>>, vector<4x3xf32>
      %c0_35 = arith.constant 0 : index
      %c0_36 = arith.constant 0 : index
      %c0_37 = arith.constant 0 : index
      %63 = vector.load %arg6[%c0_35, %c0_36, %c0_37] : memref<1x4x3xf32, #tpu.memory_space<vmem>>, vector<1x4x3xf32>
      %64 = vector.shape_cast %63 : vector<1x4x3xf32> to vector<4x3xf32>
      %65 = vector.shape_cast %62 : vector<4x3xf32> to vector<1x4x3xf32>
      tpu.vector_store %arg6[%c0_35, %c0_36, %c0_37], %65 {strides = array<i32>} : memref<1x4x3xf32, #tpu.memory_space<vmem>>, vector<1x4x3xf32>,
    } else {
    }
    return
  }
  func.func @transform_0(%arg0: i32, %arg1: i32) -> (i32, i32, i32) {
    %c0_i32 = arith.constant 0 : i32
    %0 = arith.addi %c0_i32, %arg1 : i32
    %c0_i32_0 = arith.constant 0 : i32
    %c0_i32_1 = arith.constant 0 : i32
    return %arg0, %c0_i32_0, %0 : i32, i32, i32
  }
  func.func @transform_1(%arg0: i32, %arg1: i32) -> (i32, i32, i32) {
    %c1_i32 = arith.constant 1 : i32
    %0 = arith.addi %c1_i32, %arg1 : i32
    %c0_i32 = arith.constant 0 : i32
    %c0_i32_0 = arith.constant 0 : i32
    return %arg0, %c0_i32, %0 : i32, i32, i32
  }
  func.func @transform_2(%arg0: i32, %arg1: i32) -> (i32, i32, i32) {
    %c2_i32 = arith.constant 2 : i32
    %0 = arith.addi %c2_i32, %arg1 : i32
    %c0_i32 = arith.constant 0 : i32
    %c0_i32_0 = arith.constant 0 : i32
    return %arg0, %c0_i32, %0 : i32, i32, i32
  }
  func.func @transform_3(%arg0: i32, %arg1: i32) -> (i32, i32) {
    %c0_i32 = arith.constant 0 : i32
    %c0_i32_0 = arith.constant 0 : i32
    %c0_i32_1 = arith.constant 0 : i32
    return %c0_i32, %c0_i32_0 : i32, i32
  }
  func.func @transform_4(%arg0: i32, %arg1: i32) -> (i32, i32, i32) {
    %c0_i32 = arith.constant 0 : i32
    %c0_i32_0 = arith.constant 0 : i32
    %c0_i32_1 = arith.constant 0 : i32
    return %arg0, %c0_i32, %c0_i32_0 : i32, i32, i32
  }
}

</mosaic_0001>

<bundles_post_ra>
// kernel: tpu_custom_call.1
= control target key start
LH: loop header
LB: loop body
LE: loop exit
PB: predicated region body
PF: predicated region fallthrough
CT: control target
= control target key end

     0   :  { %s1173_s0 = inlined_call_operand.hbm [shape: f32[2,4,384], index: 0, kind: input, shape index: {}]   ;;  %s1174_s1 = inlined_call_operand.hbm [shape: f32[2,4,384], index: 1, kind: input, shape index: {}]   ;;  %s1175_s2 = inlined_call_operand.hbm [shape: f32[2,4,384], index: 2, kind: input, shape index: {}]   ;;  %s1176_s3 = inlined_call_operand.vmem [shape: f32[4,4], index: 3, kind: input, shape index: {}]   ;;  %s1177_s4 = inlined_call_operand.vmem [shape: f32[2,4,3], index: 4, kind: output, shape index: {}]  }
   0x1   :  { %1181 = sst [smem:[#allocation11_spill]] %s1174_s1 }
   0x2   :  { %9 = vsyncpa [#allocation5], 0 }
   0x3   :  { %11 = vsyncpa [#allocation5 + $0x1], 0 }
   0x4   :  { %12 = vsyncpa [#allocation7], 0 }
   0x5   :  { %14 = vsyncpa [#allocation7 + $0x1], 0  ;;  %s955_s15 = smov 0   ;;  %s957_s16 = smov 0  }
   0x6   :  { %s959_s17 = smov 0   ;;  %s961_s18 = smov 0  }
   0x7   :  { %s963_s19 = smov 0   ;;  %s965_s20 = smov 0  }
   0x8 LB: > { %s1179_s21 = sadd.s32 4294967295, %s921_s20   ;;  %s32_s22 = sadd.s32 1, %s917_s19  ;;  %s921_s20 = sphi %s965_s20, %s20_s20   ;;  %s917_s19 = sphi %s963_s19, %s1195_s19   ;;  %s913_s18 = sphi %s961_s18, %s1194_s18   ;;  %s909_s17 = sphi %s959_s17, %s1193_s17   ;;  %s905_s16 = sphi %s957_s16, %s1192_s16   ;;  %s901_s15 = sphi %s955_s15, %s1191_s15  }
   0x9   : > { %p34_p0 = scmp.ge.s32.totalorder %s32_s22, 2  ;;  %s41_s23 = sadd.s32 1, %s909_s17 }
   0xa   : > { %p48_p1 = scmp.ne.s32.totalorder %s909_s17, %s905_s16  ;;  %p49_p2 = scmp.eq.s32.totalorder %s921_s20, 0 }
   0xb   : > { %s1197_s22 = smov (%p34_p0, %s32_s22), 0  ;;  %p54_p4 = scmp.ne.s32.totalorder %s905_s16, %s901_s15 }
   0xc   : > { %p50_p3 = por %p49_p2, %p48_p1  ;;  %s36_s24 = ssub.s32 %s917_s19, %s1197_s22 }
   0xd   : > { %p55_p5 = scmp.eq.s32.totalorder %s1179_s21, 0  ;;  %p39_p6 = scmp.eq.s32.totalorder %s36_s24, 0 }
   0xe   : > { %p721_p8 = scmp.lt.s32.totalorder %s921_s20, 2  ;;  %s188_s27 = sand.u32 1, %s909_s17  }
   0xf   : > { %p996_p7 = por %p55_p5, %p54_p4  ;;  %s1006_s28 = smul.u32 192, %s917_s19 }
  0x10   : > { %s1002_s26 = scalar_select %p39_p6, %s909_s17, %s41_s23  }
  0x11   : > { %s1182_s25 = scalar_select %p996_p7, 1, 0 }
  0x12   : > { %s1010_s29 = sshll.u32 %s188_s27, 2  ;;  %p1012_p9 = pnand %p721_p8, %p50_p3 }
  0x13   : > { %s208_s5 = sand.u32 1, %s921_s20   ;;  %s1184_s1 = sld [smem:[#allocation11_spill]] }
  0x14   : > { %s1183_s30 = scalar_select %p1012_p9, 1, 0 }
  0x15   : > { %s212_s9 = scalar_lea.vmem [#allocation6], %s1010_s29  ;;  %s1026_s12 = scalar_lea.sflag [#allocation7], %s208_s5 }
  0x16   : > { %s222_s10 = sshll.u32 %s212_s9, 4  ;;  %p1031_p11 = pneg %p1012_p9  ;;  %s1024_s10 = int_to_ptr.vmem [resolvable:$true] %s222_s10 }
  0x19   : > { %s589_s8 = scalar_lea.hbm %s1184_s1, %s1006_s28  ;;  %s780_s24 = scalar_lea.hbm %s1184_s1, 384 }
  0x1a   : > { %s1022_s11 = scalar_lea.hbm %s589_s8, 64  ;;  %s805_s13 = scalar_lea.hbm %s589_s8, 128 }
  0x1b   : > { %p776_p10 = scmp.ne.s32.totalorder %s1022_s11, %s805_s13  ;;  %p781_p0 = scmp.lt.u32.totalorder %s1022_s11, %s1184_s1 }
  0x1c   : > { %p782_p1 = scmp.lt.u32.totalorder %s780_s24, %s805_s13  ;;  %p784_p3 = scmp.lt.u32.totalorder %s805_s13, %s1022_s11 }
  0x1d   : > { %p778_p12 = pnand %p1031_p11, %p776_p10 }
  0x1e   : > { %p783_p2 = por %p782_p1, %p781_p0 }
  0x1f   : > { %p779_p13 = pneg %p778_p12 }
  0x20   : > { %p785_p4 = por %p784_p3, %p783_p2 }
  0x22   : > { %p786_p5 = pnand %p785_p4, %p779_p13 }
  0x24   : > { %789 = shalt.err (!%p786_p5)
}
  0x25   : > { %s790_s5 = scalar_lea.vmem %s1024_s10, 64  ;;  %s923_s8 = smov [#allocation6]  }
  0x26   : > { %p791_p6 = scmp.ne.s32.totalorder %s1024_s10, %s790_s5  ;;  %s795_s9 = sshll.u32 %s923_s8, 4  ;;  %s796_s9 = int_to_ptr.vmem [resolvable:$false] %s795_s9 }
  0x27   : > { %s797_s15 = scalar_lea.vmem %s796_s9, 128  ;;  %p798_p12 = scmp.lt.s32.totalorder %s1024_s10, %s796_s9 }
  0x28   : > { %p793_p8 = pnand %p791_p6, %p1031_p11  ;;  %p799_p7 = scmp.lt.s32.totalorder %s797_s15, %s790_s5 }
  0x2a   : > { %p794_p10 = pneg %p793_p8  ;;  %p800_p0 = por %p799_p7, %p798_p12 }
  0x2c   : > { %p801_p1 = pnand %p800_p0, %p794_p10 }
  0x2e   : > { %804 = shalt.err (!%p801_p1)
}
  0x2f   : > { %717 = dma.hbm_to_vmem [thread:$0]  (!%p1012_p9), %s1022_s11, 64, %s1024_s10, %s1026_s12  }
  0x30   : > { %p685_p13 = scmp.ge.s32.totalorder %s921_s20, 1  ;;  %p248_p2 = scmp.lt.s32.totalorder %s921_s20, 3 }
  0x31   : > { %s1065_s6 = scalar_lea.hbm %s1173_s0, %s1006_s28  ;;  %s192_s7 = scalar_lea.vmem [#allocation4], %s1010_s29 }
  0x32   : > { %p1057_p3 = pnand %p685_p13, %p248_p2  ;;  %s201_s5 = sshll.u32 %s192_s7, 4  ;;  %s1068_s5 = int_to_ptr.vmem [resolvable:$true] %s201_s5 }
  0x33   : > { %s1074_s8 = scalar_lea.hbm %s1175_s2, %s1006_s28  ;;  %s189_s9 = scalar_lea.sflag [#allocation5], %s188_s27 }
  0x34   : > { %s1186_s13 = scalar_select %p1057_p3, 1, 0 }
  0x35   : > { %s806_s15 = scalar_lea.hbm %s1065_s6, 64  ;;  %s811_s21 = scalar_lea.hbm %s1173_s0, 384 }
  0x36   : > { %p807_p7 = scmp.ne.s32.totalorder %s1065_s6, %s806_s15  ;;  %p812_p6 = scmp.lt.u32.totalorder %s1065_s6, %s1173_s0 }
  0x37   : > { %p813_p8 = scmp.lt.u32.totalorder %s811_s21, %s806_s15  ;;  %p815_p12 = scmp.lt.u32.totalorder %s806_s15, %s1065_s6 }
  0x38   : > { %p809_p4 = pnand %p807_p7, %p1031_p11 }
  0x39   : > { %p814_p10 = por %p813_p8, %p812_p6 }
  0x3a   : > { %p810_p5 = pneg %p809_p4 }
  0x3b   : > { %p816_p0 = por %p815_p12, %p814_p10 }
  0x3d   : > { %p817_p1 = pnand %p816_p0, %p810_p5 }
  0x3f   : > { %820 = shalt.err (!%p817_p1)
}
  0x40   : > { %s821_s27 = scalar_lea.vmem %s1068_s5, 64  ;;  %s924_s28 = smov [#allocation4]  }
  0x41   : > { %p822_p13 = scmp.ne.s32.totalorder %s1068_s5, %s821_s27  ;;  %s826_s10 = sshll.u32 %s924_s28, 4  ;;  %s827_s10 = int_to_ptr.vmem [resolvable:$false] %s826_s10 }
  0x42   : > { %s828_s1 = scalar_lea.vmem %s827_s10, 128  ;;  %p829_p4 = scmp.lt.s32.totalorder %s1068_s5, %s827_s10 }
  0x43   : > { %p824_p2 = pnand %p822_p13, %p1031_p11  ;;  %p830_p3 = scmp.lt.s32.totalorder %s828_s1, %s821_s27 }
  0x45   : > { %p825_p7 = pneg %p824_p2  ;;  %p831_p6 = por %p830_p3, %p829_p4 }
  0x47   : > { %p832_p8 = pnand %p831_p6, %p825_p7 }
  0x49   : > { %835 = shalt.err (!%p832_p8)
}
  0x4a   : > { %714 = dma.hbm_to_vmem [thread:$0]  (!%p1012_p9), %s1065_s6, 64, %s1068_s5, %s189_s9  }
  0x4b   : > { %s1100_s21 = scalar_lea.hbm %s1074_s8, 128  ;;  %s233_s11 = scalar_lea.vmem [#allocation8], %s1010_s29 }
  0x4c   : > { %s243_s15 = sshll.u32 %s233_s11, 4  ;;  %s866_s23 = scalar_lea.hbm %s1074_s8, 192  ;;  %s244_s15 = int_to_ptr.vmem [resolvable:$true] %s243_s15 }
  0x4d   : > { %p837_p3 = scmp.ne.s32.totalorder %s1100_s21, %s866_s23  ;;  %s841_s27 = scalar_lea.hbm %s1175_s2, 384 }
  0x4e   : > { %p842_p12 = scmp.lt.u32.totalorder %s1100_s21, %s1175_s2  ;;  %p843_p0 = scmp.lt.u32.totalorder %s841_s27, %s866_s23 }
  0x4f   : > { %p839_p5 = pnand %p837_p3, %p1031_p11  ;;  %p845_p13 = scmp.lt.u32.totalorder %s866_s23, %s1100_s21 }
  0x50   : > { %p844_p1 = por %p843_p0, %p842_p12 }
  0x51   : > { %p840_p10 = pneg %p839_p5 }
  0x52   : > { %p846_p2 = por %p845_p13, %p844_p1 }
  0x54   : > { %p847_p7 = pnand %p846_p2, %p840_p10 }
  0x56   : > { %850 = shalt.err (!%p847_p7)
}
  0x57   : > { %s851_s29 = scalar_lea.vmem %s244_s15, 64  ;;  %s925_s6 = smov [#allocation8]  }
  0x58   : > { %p852_p4 = scmp.ne.s32.totalorder %s244_s15, %s851_s29  ;;  %s856_s5 = sshll.u32 %s925_s6, 4  ;;  %s857_s5 = int_to_ptr.vmem [resolvable:$false] %s856_s5 }
  0x59   : > { %s858_s8 = scalar_lea.vmem %s857_s5, 128  ;;  %p859_p3 = scmp.lt.s32.totalorder %s244_s15, %s857_s5 }
  0x5a   : > { %p854_p6 = pnand %p852_p4, %p1031_p11  ;;  %p860_p5 = scmp.lt.s32.totalorder %s858_s8, %s851_s29 }
  0x5c   : > { %p855_p8 = pneg %p854_p6  ;;  %p861_p9 = por %p860_p5, %p859_p3 }
  0x5e   : > { %p862_p0 = pnand %p861_p9, %p855_p8 }
  0x60   : > { %865 = shalt.err (!%p862_p0)
}
  0x61   : > { %p1187_p12 = scmp.ne.s32.totalorder %s1183_s30, 0  ;;  %p1188_p10 = scmp.ne.s32.totalorder %s1186_s13, 0 }
  0x62   : > { %s254_s14 = sand.u32 (!%p1188_p10), 1, %s905_s16   ;;  %p1189_p11 = scmp.ne.s32.totalorder (!%p1188_p10), %s1182_s25, 0 }
  0x63   : > { %720 = dma.hbm_to_vmem [thread:$0]  (!%p1187_p12), %s1100_s21, 64, %s244_s15, %s1026_s12  }
  0x64   : > { %252 = sbr.rel (%p1188_p10) target bundleno = 940 (0x3ac), region = 36  ;;  %s686_s9 = sshll.u32 (!%p1188_p10), %s254_s14, 2 }
  0x65   : > { %s255_s1 = scalar_lea.sflag (!%p1188_p10), [#allocation5], %s254_s14  ;;  %s258_s11 = scalar_lea.vmem (!%p1188_p10), [#allocation4], %s686_s9 }
  0x6b   : > { %892 = dma.done.wait (%p1189_p11), %s255_s1, 64  }
  0x6c   : > { %894 = vsyncadd (%p1189_p11), %s255_s1, 4294967232  ;;  %s1190_s23 = sadd.s32 4294967295, %s921_s20   ;;  %s267_s12 = scalar_lea.vmem [#allocation6], %s686_s9 }
  0x6d   : > { %s263_s30 = sand.u32 1, %s1190_s23  }
  0x6e   : > { %s264_s24 = scalar_lea.sflag [#allocation7], %s263_s30 }
  0x6f   : > { %896 = dma.done.wait (%p1189_p11), %s264_s24, 128  }
  0x70   : > { %898 = vsyncadd (%p1189_p11), %s264_s24, 4294967168  ;;  %vm322_vm0 = vcmask 19456   ;;  %v926_v0 = vmov 0.0   ;;  %vm927_vm1 = vmmov 0   ;;  %vm332_vm2 = vcmask 1043456   ;;  %s276_s25 = scalar_lea.vmem [#allocation8], %s686_s9 }
  0x71   : > { %323 = vst.msk [vmem:[#allocation3] sm:$0xf] %vm322_vm0, %v926_v0  ;;  %406 = vmatprep.mubr.f32.mxu0 %v926_v0  ;;  %699 = vmatprep.subr.mxu1 %v926_v0  ;;  %vm328_vm3 = vcmask 31744   ;;  %v325_v1 = vld [vmem:[%s267_s12] sm:$0xf]  ;;  %v488_v5 = vlaneseq  ;;  %vm320_vm5 = vcmask 3072  }
  0x72   : > { %701 = vmatprep.mubr.msk.f32.mxu1 %vm927_vm1, %v926_v0  ;;  %v324_v2 = vld [vmem:[%s258_s11] sm:$0xf]  ;;  %v327_v3 = vld [vmem:[%s1176_s3] sm:$0xf]  ;;  %690 = vmatprep.subr.msk.mxu0 %vm332_vm2, %v325_v1  ;;  %v928_v18 = vmov -inf   ;;  %v929_v19 = vmov 0  }
  0x73   : > { %v326_v4 = vld [vmem:[%s276_s25] sm:$0xf]  ;;  %691 = vmatpush1.msk.msra.mxu0 %vm332_vm2, %v324_v2  ;;  %v489_v11 = vand.u32 127, %v488_v5  ;;  %321 = vst.msk [vmem:[#allocation2] sm:$0xf] %vm320_vm5, %v928_v18  ;;  %774 = vset.pattern.permute.xlu0 %v929_v19  ;;  %vm528_vm10 = vcmask 7168  }
  0x74   : > { %700 = vmatpush3.msk.msra.mxu1 %vm332_vm2, %v326_v4  ;;  %692 = vmatmul.mubr.msk.f32.vlgmr.msra.gmra.mrb[0].mxu0 %vm328_vm3, %v327_v3  ;;  %p312_p9 = scmp.lt.s32.totalorder %s913_s18, 1  ;;  %vm530_vm11 = vcmask 15360  }
  0x75   : > { %702 = vmatmul.mubr.msk.f32.vlgmr.msra.gmra.mrb[0].mxu1 %vm328_vm3, %v327_v3  ;;  %vm493_vm4 = vcmp.lt.s32.totalorder %v489_v11, 16 }
  0x76   : > { %s1199_s18 = smov (!%p312_p9, %s913_s18), 1 }
  0x77   : > { %s689_s15 = sshll.u32 %s1199_s18, 2 }
  0x78   : > { %v537_v46 = vld [vmem:[#allocation3] sm:$0xf]  ;;  %s315_s28 = scalar_lea.vmem %s1177_s4, %s689_s15 }
  0x7a   : > { %v532_v20 = vld [vmem:[#allocation2] sm:$0xf] }
 0x147   : > { %v408_v6 = vpop.f32.mrb[0].mxu0 }
 0x148   : > { %v479_v7 = vpop.f32.mrb[0].mxu1  ;;  %v483_v8 = vmul.f32 %v408_v6, %v324_v2  ;;  %v410_v9 = vpop.f32.mrb[1].mxu0 }
 0x149   : > { %v703_v10 = vpop.f32.mrb[1].mxu1  ;;  %v484_v12 = vmul.f32 %v410_v9, %v325_v1  ;;  %v485_v13 = vmul.f32 %v479_v7, %v326_v4 }
 0x14b   : > { %v486_v14 = vadd.f32 %v484_v12, %v483_v8 }
 0x14d   : > { %v487_v15 = vadd.f32 %v486_v14, %v485_v13 }
 0x14f   : > { %v494_v16 = vsel %vm493_vm4, %v487_v15, -inf }
 0x150   : > { %v495_v17 = vsel %vm332_vm2, %v494_v16, -inf }
 0x151   : > { %496 = vmax.xlane.f32.xlu0 %v495_v17 }
 0x1de   : > { %v497_v21 = vpop.xlane.xlu0 %496 }
 0x1df   : > { %vm498_vm6 = vcmp.eq.f32.partialorder %v494_v16, %v497_v21  ;;  %vm533_vm7 = vcmp.gt.f32.partialorder %v497_v21, %v532_v20 }
 0x1e0   : > { %v499_v22 = vsel %vm498_vm6, %v489_v11, 128  ;;  %v534_v23 = vsel %vm533_vm7, %v497_v21, %v532_v20  ;;  %v538_v42 = vsel %vm533_vm7, 1, %v929_v19 }
 0x1e1   : > { %v500_v24 = vsel %vm332_vm2, %v499_v22, 2147483647  ;;  %536 = vst.msk [vmem:[#allocation2] sm:$0xf] %vm320_vm5, %v534_v23 }
 0x1e2   : > { %v502_v25 = vshra.s32 %v500_v24, 16  ;;  %v501_v27 = vand.u32 65535, %v500_v24 }
 0x1e4   : > { %v504_v26 = vcvt.s32.f32 %v502_v25  ;;  %v503_v29 = vcvt.s32.f32 %v501_v27 }
 0x1e6   : > { %505 = vmin.xlane.f32.xlu0 %v504_v26 }
 0x273   : > { %v506_v28 = vpop.xlane.xlu0 %505 }
 0x274   : > { %vm507_vm8 = vcmp.eq.f32.partialorder %v504_v26, %v506_v28  ;;  %v512_v31 = vcvt.f32.s32 %v506_v28 }
 0x275   : > { %v508_v30 = vsel %vm507_vm8, %v503_v29, inf }
 0x276   : > { %509 = vmin.xlane.f32.xlu1 %v508_v30  ;;  %v513_v33 = vshll.u32 %v512_v31, 16 }
 0x303   : > { %v510_v32 = vpop.xlane.xlu1 %509 }
 0x304   : > { %v511_v34 = vcvt.f32.s32 %v510_v32 }
 0x306   : > { %v514_v35 = vadd.s32 %v513_v33, %v511_v34 }
 0x308   : > { %vm515_vm9 = vcmp.eq.s32.totalorder %v489_v11, %v514_v35 }
 0x309   : > { %v520_v36 = vsel %vm515_vm9, %v325_v1, 0.0  ;;  %v516_v37 = vsel %vm515_vm9, %v324_v2, 0.0  ;;  %v524_v40 = vsel %vm515_vm9, %v326_v4, 0.0 }
 0x30a   : > { %v521_v38 = vsel %vm332_vm2, %v520_v36, 0.0  ;;  %v517_v39 = vsel %vm332_vm2, %v516_v37, 0.0  ;;  %v525_v41 = vsel %vm332_vm2, %v524_v40, 0.0 }
 0x30b   : > { %522 = vadd.xlane.f32.xlu0 %v521_v38  ;;  %518 = vadd.xlane.f32.xlu1 %v517_v39 }
 0x30f   : > { %526 = vadd.xlane.f32.xlu1 %v525_v41 }
 0x321   : > { %540 = vperm.xlu0 %774, %v538_v42  }
 0x398   : > { %v519_v43 = vpop.xlane.xlu1 %518  ;;  %v523_v44 = vpop.xlane.xlu0 %522 }
 0x399   : > { %v529_v47 = vsel %vm528_vm10, %v519_v43, %v523_v44 }
 0x39c   : > { %v527_v45 = vpop.xlane.xlu1 %526 }
 0x39d   : > { %v531_v49 = vsel %vm530_vm11, %v529_v47, %v527_v45 }
 0x3a0   : > { %v541_v48 = vpop.permute.xlu0 %540 }
 0x3a1   : > { %vm542_vm12 = vcmp.eq.s32.totalorder %v541_v48, 1 }
 0x3a2   : > { %v543_v50 = vsel %vm542_vm12, %v531_v49, %v537_v46 }
 0x3a3   : > { %545 = vst.msk [vmem:[#allocation3] sm:$0xf] %vm322_vm0, %v543_v50 }
 0x3aa   : > { %v549_v51 = vld [vmem:[#allocation3] sm:$0xf] }
 0x3ab   : > { %550 = vst.msk [vmem:[%s315_s28] sm:$0xf] %vm322_vm0, %v549_v51 }
 0x3ac PF: > { %s20_s20 = sadd.s32 1, %s921_s20   ;;  %s1191_s15 = smov %s905_s16 }
 0x3ad   : > { %p17_p1 = scmp.ge.s32.totalorder %s20_s20, 4   ;;  %s1192_s16 = smov %s909_s17 }
 0x3ae   : > { %s1193_s17 = smov %s1002_s26  ;;  %s1194_s18 = smov %s917_s19 }
 0x3af   : > { %s1195_s19 = smov %s1197_s22  ;;  %19 = sbr.rel (!%p17_p1) target bundleno = 8 (0x8), region = 108 }
 0x3b6   :  { %570 = vsyncpa [#allocation5], 1 }
 0x3b7   :  { %572 = vsyncpa [#allocation5 + $0x1], 1 }
 0x3b8   :  { %573 = vsyncpa [#allocation7], 1 }
 0x3b9   :  { %575 = vsyncpa [#allocation7 + $0x1], 1 }

</bundles_post_ra>
